<compile_context>
chip_gen: v6e
topology: v6e:2x2x1
jax: 0.10.0
libtpu: 0.0.40
codegen_flags: <defaults>
</compile_context>

<pallas_src>
import jax
import jax.numpy as jnp
from jax.experimental import pallas as pl
from jax.experimental.pallas import tpu as pltpu

K_IN = 28 * 28     # 784
H1 = 128
H2 = 64
N_OUT = 10
N_PAD = 16         # narrow padded logits width (block last dim == full array dim)

TB_MAX = 2048      # max rows per grid step (fits VMEM on v5e/v6e/v7x with 2x buffering)


def _round_up(x, m):
    return ((x + m - 1) // m) * m


def mlp_kernel(x_ref, w1_ref, b1_ref, w2_ref, b2_ref, w3_ref, b3_ref, o_ref):
    # fc1 + ReLU: cast the f32 activation tile to bf16 in VMEM (no extra HBM pass),
    # accumulate in f32 on the MXU.
    x = x_ref[...].astype(jnp.bfloat16)
    h1 = jnp.dot(x, w1_ref[...], preferred_element_type=jnp.float32)
    h1 = jnp.maximum(h1 + b1_ref[...], 0.0)
    # fc2 + ReLU
    h2 = jnp.dot(h1.astype(jnp.bfloat16), w2_ref[...],
                 preferred_element_type=jnp.float32)
    h2 = jnp.maximum(h2 + b2_ref[...], 0.0)
    # fc3 (16-wide padded logits; <10% of FLOPs, HBM DMA is the binding resource)
    out = jnp.dot(h2.astype(jnp.bfloat16), w3_ref[...],
                  preferred_element_type=jnp.float32)
    o_ref[...] = (out + b3_ref[...]).astype(o_ref.dtype)


@jax.jit
def mlp_forward(x, w1, b1, w2, b2, w3, b3):
    """x: (B, 784) float32 -> (B, 10) float32. Weights stored as (in, out)."""
    B = x.shape[0]

    # --- tile / grid selection -------------------------------------------------
    # Pad B only to a multiple of 16; force >= 2 grid steps for B > 32 so the
    # "parallel" batch axis shards across both TensorCores on v7x.
    bp0 = _round_up(max(B, 1), 16)
    n_steps = pl.cdiv(bp0, TB_MAX)
    if B > 32:
        n_steps = max(n_steps, 2)
    tb = _round_up(pl.cdiv(bp0, n_steps), 16)
    Bp = tb * n_steps

    # Row-pad x only if needed (no dtype conversion, no K padding).
    if Bp != B:
        xp = jnp.zeros((Bp, K_IN), x.dtype).at[:B, :].set(x)
    else:
        xp = x

    # Weights: cast once to bf16 (tiny; VMEM-resident across the whole grid).
    w1b = w1.astype(jnp.bfloat16)                                  # (784, 128)
    w2b = w2.astype(jnp.bfloat16)                                  # (128, 64)
    w3p = jnp.zeros((H2, N_PAD), jnp.bfloat16).at[:, :N_OUT].set(  # (64, 16)
        w3.astype(jnp.bfloat16))
    b1f = b1.astype(jnp.float32).reshape(1, H1)
    b2f = b2.astype(jnp.float32).reshape(1, H2)
    b3p = jnp.zeros((1, N_PAD), jnp.float32).at[:, :N_OUT].set(
        b3.astype(jnp.float32).reshape(1, N_OUT))

    grid = (Bp // tb,)

    flops = 2 * Bp * (K_IN * H1 + H1 * H2 + H2 * N_PAD)
    bytes_accessed = (
        xp.size * 4                                   # f32 activation read
        + (w1b.size + w2b.size + w3p.size) * 2        # bf16 weights
        + (b1f.size + b2f.size + b3p.size) * 4        # f32 biases
        + Bp * N_PAD * 4                              # f32 logits writeback
    )

    # VMEM need: 2x (tb x 784 f32 in) + 2x (tb x 16 f32 out) + weights + headroom.
    vmem_need = 2 * tb * K_IN * 4 + 2 * tb * N_PAD * 4 + (1 << 20)
    vmem_limit = min(_round_up(vmem_need, 1 << 20) + (4 << 20), 48 << 20)

    out = pl.pallas_call(
        mlp_kernel,
        out_shape=jax.ShapeDtypeStruct((Bp, N_PAD), jnp.float32),
        grid=grid,
        in_specs=[
            pl.BlockSpec((tb, K_IN), lambda i: (i, 0)),   # x tile (pipelined, f32)
            pl.BlockSpec((K_IN, H1), lambda i: (0, 0)),   # w1 (resident)
            pl.BlockSpec((1, H1), lambda i: (0, 0)),      # b1
            pl.BlockSpec((H1, H2), lambda i: (0, 0)),     # w2
            pl.BlockSpec((1, H2), lambda i: (0, 0)),      # b2
            pl.BlockSpec((H2, N_PAD), lambda i: (0, 0)),  # w3 (16-wide padded)
            pl.BlockSpec((1, N_PAD), lambda i: (0, 0)),   # b3 (16-wide padded)
        ],
        out_specs=pl.BlockSpec((tb, N_PAD), lambda i: (i, 0)),
        compiler_params=pltpu.CompilerParams(
            dimension_semantics=("parallel",),
            vmem_limit_bytes=vmem_limit,
        ),
        cost_estimate=pl.CostEstimate(
            flops=flops, transcendentals=0, bytes_accessed=bytes_accessed),
    )(xp, w1b, b1f, w2b, b2f, w3p, b3p)

    return out[:B, :N_OUT]


def init_params(key):
    """Deterministic init matching nn.Linear shapes (stored as (in, out))."""
    k1, k2, k3, k4, k5, k6 = jax.random.split(key, 6)

    def linear_init(kw, kb, fan_in, fan_out):
        bound = 1.0 / (fan_in ** 0.5)
        w = jax.random.uniform(kw, (fan_in, fan_out), jnp.float32, -bound, bound)
        b = jax.random.uniform(kb, (1, fan_out), jnp.float32, -bound, bound)
        return w, b

    w1, b1 = linear_init(k1, k2, K_IN, H1)
    w2, b2 = linear_init(k3, k4, H1, H2)
    w3, b3 = linear_init(k5, k6, H2, N_OUT)
    return w1, b1, w2, b2, w3, b3


if __name__ == "__main__":
    key = jax.random.PRNGKey(0)
    kx, kp = jax.random.split(key)

    batch = 8
    # equivalent to a (batch, 1, 28, 28) image flattened by x.view(-1, 784)
    x = jax.random.normal(kx, (batch, K_IN), dtype=jnp.float32)

    w1, b1, w2, b2, w3, b3 = init_params(kp)

    out = mlp_forward(x, w1, b1, w2, b2, w3, b3)
    out = jax.block_until_ready(out)

    # f32 reference in plain JAX (kernel uses bf16 matmul inputs -> loosened tol)
    ref = jnp.maximum(x @ w1 + b1, 0.0)
    ref = jnp.maximum(ref @ w2 + b2, 0.0)
    ref = ref @ w3 + b3
    assert out.shape == (batch, N_OUT)
    assert jnp.allclose(out, ref, atol=5e-2, rtol=5e-2), (
        float(jnp.max(jnp.abs(out - ref))))

    print("KERNEL_OK")
</pallas_src>

<mosaic_0001>
module attributes {stable_mosaic.version = 11 : i64} {
  func.func @mlp_kernel(%arg0: i32, %arg1: memref<16x784xf32, #tpu.memory_space<vmem>>, %arg2: memref<784x128xbf16, #tpu.memory_space<vmem>>, %arg3: memref<1x128xf32, #tpu.memory_space<vmem>>, %arg4: memref<128x64xbf16, #tpu.memory_space<vmem>>, %arg5: memref<1x64xf32, #tpu.memory_space<vmem>>, %arg6: memref<64x16xbf16, #tpu.memory_space<vmem>>, %arg7: memref<1x16xf32, #tpu.memory_space<vmem>>, %arg8: memref<16x16xf32, #tpu.memory_space<vmem>>) attributes {dimension_semantics = [#tpu.dimension_semantics<parallel>], iteration_bounds = array<i64: 1>, scalar_prefetch = 0 : i64, scratch_operands = 0 : i64, tpu.core_type = #tpu.core_type<tc>, window_params = [{transform_indices = @transform_0, window_bounds = array<i64: 16, 784>}, {pipeline_mode = #tpu.pipeline_mode<synchronous>, transform_indices = @transform_1, window_bounds = array<i64: 784, 128>}, {pipeline_mode = #tpu.pipeline_mode<synchronous>, transform_indices = @transform_2, window_bounds = array<i64: 1, 128>}, {pipeline_mode = #tpu.pipeline_mode<synchronous>, transform_indices = @transform_3, window_bounds = array<i64: 128, 64>}, {pipeline_mode = #tpu.pipeline_mode<synchronous>, transform_indices = @transform_4, window_bounds = array<i64: 1, 64>}, {pipeline_mode = #tpu.pipeline_mode<synchronous>, transform_indices = @transform_5, window_bounds = array<i64: 64, 16>}, {pipeline_mode = #tpu.pipeline_mode<synchronous>, transform_indices = @transform_6, window_bounds = array<i64: 1, 16>}, {transform_indices = @transform_7, window_bounds = array<i64: 16, 16>}]} {
    %c0 = arith.constant 0 : index
    %c0_0 = arith.constant 0 : index
    %0 = vector.load %arg1[%c0, %c0_0] : memref<16x784xf32, #tpu.memory_space<vmem>>, vector<16x784xf32>
    %1 = arith.truncf %0 : vector<16x784xf32> to vector<16x784xbf16>
    %c0_1 = arith.constant 0 : index
    %c0_2 = arith.constant 0 : index
    %2 = vector.load %arg2[%c0_1, %c0_2] : memref<784x128xbf16, #tpu.memory_space<vmem>>, vector<784x128xbf16>
    %cst = arith.constant dense<0.000000e+00> : vector<16x128xf32>
    %3 = tpu.matmul %1, %2, %cst {dimension_numbers = #tpu.dot_dimension_numbers<[1], [0], [0], [1], [0, 0, 1, 1], [], []>} : vector<16x784xbf16>, vector<784x128xbf16>, vector<16x128xf32> -> vector<16x128xf32>
    %c0_3 = arith.constant 0 : index
    %c0_4 = arith.constant 0 : index
    %4 = vector.load %arg3[%c0_3, %c0_4] : memref<1x128xf32, #tpu.memory_space<vmem>>, vector<1x128xf32>
    %5 = vector.broadcast %4 : vector<1x128xf32> to vector<16x128xf32>
    %6 = arith.addf %3, %5 : vector<16x128xf32>
    %cst_5 = arith.constant 0.000000e+00 : f32
    %7 = vector.broadcast %cst_5 : f32 to vector<16x128xf32>
    %8 = arith.maximumf %6, %7 : vector<16x128xf32>
    %9 = arith.truncf %8 : vector<16x128xf32> to vector<16x128xbf16>
    %c0_6 = arith.constant 0 : index
    %c0_7 = arith.constant 0 : index
    %10 = vector.load %arg4[%c0_6, %c0_7] : memref<128x64xbf16, #tpu.memory_space<vmem>>, vector<128x64xbf16>
    %cst_8 = arith.constant dense<0.000000e+00> : vector<16x64xf32>
    %11 = tpu.matmul %9, %10, %cst_8 {dimension_numbers = #tpu.dot_dimension_numbers<[1], [0], [0], [1], [0, 0, 1, 1], [], []>} : vector<16x128xbf16>, vector<128x64xbf16>, vector<16x64xf32> -> vector<16x64xf32>
    %c0_9 = arith.constant 0 : index
    %c0_10 = arith.constant 0 : index
    %12 = vector.load %arg5[%c0_9, %c0_10] : memref<1x64xf32, #tpu.memory_space<vmem>>, vector<1x64xf32>
    %13 = vector.broadcast %12 : vector<1x64xf32> to vector<16x64xf32>
    %14 = arith.addf %11, %13 : vector<16x64xf32>
    %cst_11 = arith.constant 0.000000e+00 : f32
    %15 = vector.broadcast %cst_11 : f32 to vector<16x64xf32>
    %16 = arith.maximumf %14, %15 : vector<16x64xf32>
    %17 = arith.truncf %16 : vector<16x64xf32> to vector<16x64xbf16>
    %c0_12 = arith.constant 0 : index
    %c0_13 = arith.constant 0 : index
    %18 = vector.load %arg6[%c0_12, %c0_13] : memref<64x16xbf16, #tpu.memory_space<vmem>>, vector<64x16xbf16>
    %cst_14 = arith.constant dense<0.000000e+00> : vector<16x16xf32>
    %19 = tpu.matmul %17, %18, %cst_14 {dimension_numbers = #tpu.dot_dimension_numbers<[1], [0], [0], [1], [0, 0, 1, 1], [], []>} : vector<16x64xbf16>, vector<64x16xbf16>, vector<16x16xf32> -> vector<16x16xf32>
    %c0_15 = arith.constant 0 : index
    %c0_16 = arith.constant 0 : index
    %20 = vector.load %arg7[%c0_15, %c0_16] : memref<1x16xf32, #tpu.memory_space<vmem>>, vector<1x16xf32>
    %21 = vector.broadcast %20 : vector<1x16xf32> to vector<16x16xf32>
    %22 = arith.addf %19, %21 : vector<16x16xf32>
    %c0_17 = arith.constant 0 : index
    %c0_18 = arith.constant 0 : index
    %23 = vector.load %arg8[%c0_17, %c0_18] : memref<16x16xf32, #tpu.memory_space<vmem>>, vector<16x16xf32>
    tpu.vector_store %arg8[%c0_17, %c0_18], %22 {strides = array<i32>} : memref<16x16xf32, #tpu.memory_space<vmem>>, vector<16x16xf32>,
    return
  }
  func.func @transform_0(%arg0: i32) -> (i32, i32) {
    %c0_i32 = arith.constant 0 : i32
    %c0_i32_0 = arith.constant 0 : i32
    return %arg0, %c0_i32 : i32, i32
  }
  func.func @transform_1(%arg0: i32) -> (i32, i32) {
    %c0_i32 = arith.constant 0 : i32
    %c0_i32_0 = arith.constant 0 : i32
    %c0_i32_1 = arith.constant 0 : i32
    return %c0_i32, %c0_i32_0 : i32, i32
  }
  func.func @transform_2(%arg0: i32) -> (i32, i32) {
    %c0_i32 = arith.constant 0 : i32
    %c0_i32_0 = arith.constant 0 : i32
    %c0_i32_1 = arith.constant 0 : i32
    return %c0_i32, %c0_i32_0 : i32, i32
  }
  func.func @transform_3(%arg0: i32) -> (i32, i32) {
    %c0_i32 = arith.constant 0 : i32
    %c0_i32_0 = arith.constant 0 : i32
    %c0_i32_1 = arith.constant 0 : i32
    return %c0_i32, %c0_i32_0 : i32, i32
  }
  func.func @transform_4(%arg0: i32) -> (i32, i32) {
    %c0_i32 = arith.constant 0 : i32
    %c0_i32_0 = arith.constant 0 : i32
    %c0_i32_1 = arith.constant 0 : i32
    return %c0_i32, %c0_i32_0 : i32, i32
  }
  func.func @transform_5(%arg0: i32) -> (i32, i32) {
    %c0_i32 = arith.constant 0 : i32
    %c0_i32_0 = arith.constant 0 : i32
    %c0_i32_1 = arith.constant 0 : i32
    return %c0_i32, %c0_i32_0 : i32, i32
  }
  func.func @transform_6(%arg0: i32) -> (i32, i32) {
    %c0_i32 = arith.constant 0 : i32
    %c0_i32_0 = arith.constant 0 : i32
    %c0_i32_1 = arith.constant 0 : i32
    return %c0_i32, %c0_i32_0 : i32, i32
  }
  func.func @transform_7(%arg0: i32) -> (i32, i32) {
    %c0_i32 = arith.constant 0 : i32
    %c0_i32_0 = arith.constant 0 : i32
    return %arg0, %c0_i32 : i32, i32
  }
}

</mosaic_0001>

<bundles_post_ra>
// kernel: mlp_forward.1
= control target key start
LH: loop header
LB: loop body
LE: loop exit
PB: predicated region body
PF: predicated region fallthrough
CT: control target
= control target key end

     0   :  { %v1072_v43 = vmov 0.0   ;;  %vm1073_vm0 = vmmov 0   ;;  %vm447_vm1 = vcmask 130048   ;;  %vm772_vm2 = vcmask 523264   ;;  %s1376_s1 = inlined_call_operand.vmem [shape: bf16[784,128], index: 1, kind: input, shape index: {}]   ;;  %s1377_s0 = inlined_call_operand.vmem [shape: f32[16,784], index: 0, kind: input, shape index: {}]   ;;  %s1378_s3 = inlined_call_operand.vmem [shape: bf16[128,64], index: 3, kind: input, shape index: {}]   ;;  %s1379_s5 = inlined_call_operand.vmem [shape: bf16[64,16], index: 5, kind: input, shape index: {}]   ;;  %s1380_s2 = inlined_call_operand.vmem [shape: f32[1,128], index: 2, kind: input, shape index: {}]   ;;  %s1381_s4 = inlined_call_operand.vmem [shape: f32[1,64], index: 4, kind: input, shape index: {}]   ;;  %s1382_s6 = inlined_call_operand.vmem [shape: f32[1,16], index: 6, kind: input, shape index: {}]   ;;  %s1383_s7 = inlined_call_operand.vmem [shape: f32[16,16], index: 7, kind: output, shape index: {}]  }
   0x1   :  { %v1011_v0 = vld [vmem:[%s1376_s1 + $0x78] sm:$0xff]   ;;  %v1015_v4 = vld [vmem:[%s1376_s1 + $0x70] sm:$0xff]   ;;  %v1019_v8 = vld [vmem:[%s1376_s1 + $0x68] sm:$0xff]  }
   0x2   :  { %v1012_v1 = vld [vmem:[%s1376_s1 + $0x38] sm:$0xff]   ;;  %889 = vmatprep.subr.bf16.mxu0 %v1011_v0  ;;  %v1016_v5 = vld [vmem:[%s1376_s1 + $0x30] sm:$0xff]   ;;  %v1020_v9 = vld [vmem:[%s1376_s1 + $0x28] sm:$0xff]  }
   0x3   :  { %v1013_v2 = vld [vmem:[%s1376_s1 + $0xf8] sm:$0xff]   ;;  %890 = vmatpush3.bf16.msra.mxu0 %v1012_v1  ;;  %v1017_v6 = vld [vmem:[%s1376_s1 + $0xf0] sm:$0xff]   ;;  %v1021_v10 = vld [vmem:[%s1376_s1 + $0xe8] sm:$0xff]  }
   0x4   :  { %v1014_v3 = vld [vmem:[%s1376_s1 + $0xb8] sm:$0xff]   ;;  %911 = vmatprep.subr.bf16.mxu1 %v1013_v2  ;;  %891 = vmatprep.subr.bf16.mxu0 %v1015_v4  ;;  %v1018_v7 = vld [vmem:[%s1376_s1 + $0xb0] sm:$0xff]   ;;  %v1022_v11 = vld [vmem:[%s1376_s1 + $0xa8] sm:$0xff]  }
   0x5   :  { %912 = vmatpush3.bf16.msra.mxu1 %v1014_v3  ;;  %v1023_v12 = vld [vmem:[%s1376_s1 + $0x60] sm:$0xff]   ;;  %v1027_v16 = vld [vmem:[%s1376_s1 + $0x58] sm:$0xff]   ;;  %v1031_v20 = vld [vmem:[%s1376_s1 + $0x50] sm:$0xff]  }
   0x6   :  { %913 = vmatprep.subr.bf16.mxu1 %v1017_v6  ;;  %v1024_v13 = vld [vmem:[%s1376_s1 + $0x20] sm:$0xff]   ;;  %v1028_v17 = vld [vmem:[%s1376_s1 + $0x18] sm:$0xff]   ;;  %v1032_v21 = vld [vmem:[%s1376_s1 + $0x10] sm:$0xff]  }
   0x7   :  { %892 = vmatpush3.bf16.msra.mxu0 %v1016_v5  ;;  %v1025_v14 = vld [vmem:[%s1376_s1 + $0xe0] sm:$0xff]   ;;  %v1029_v18 = vld [vmem:[%s1376_s1 + $0xd8] sm:$0xff]   ;;  %v1033_v22 = vld [vmem:[%s1376_s1 + $0xd0] sm:$0xff]  }
   0x8   :  { %893 = vmatprep.subr.bf16.mxu0 %v1019_v8  ;;  %v1026_v15 = vld [vmem:[%s1376_s1 + $0xa0] sm:$0xff]   ;;  %v1030_v19 = vld [vmem:[%s1376_s1 + $0x98] sm:$0xff]   ;;  %v1034_v23 = vld [vmem:[%s1376_s1 + $0x90] sm:$0xff]  }
   0x9   :  { %914 = vmatpush3.bf16.msra.mxu1 %v1018_v7  ;;  %v1035_v24 = vld [vmem:[%s1376_s1 + $0x48] sm:$0xff]   ;;  %v1039_v28 = vld [vmem:[%s1376_s1 + $0x40] sm:$0xff]   ;;  %v34_v36 = vld [vmem:[%s1377_s0 + $0x38] sm:$0xff] }
   0xa   :  { %915 = vmatprep.subr.bf16.mxu1 %v1021_v10  ;;  %v1036_v25 = vld [vmem:[%s1376_s1 + $0x8] sm:$0xff]   ;;  %v1040_v29 = vld [vmem:[%s1376_s1] sm:$0xff]   ;;  %v1043_v38 = vld [vmem:[%s1376_s1 + $0x178] sm:$0xff]  }
   0xb   :  { %894 = vmatpush3.bf16.msra.mxu0 %v1020_v9  ;;  %v1037_v26 = vld [vmem:[%s1376_s1 + $0xc8] sm:$0xff]   ;;  %v1041_v30 = vld [vmem:[%s1376_s1 + $0xc0] sm:$0xff]   ;;  %v30_v39 = vld [vmem:[%s1377_s0 + $0x18] sm:$0xff] }
   0xc   :  { %895 = vmatprep.subr.bf16.mxu0 %v1023_v12  ;;  %v1038_v27 = vld [vmem:[%s1376_s1 + $0x88] sm:$0xff]   ;;  %v35_v32 = vld [vmem:[%s1377_s0 + $0x40] sm:$0xff]  ;;  %v37_v40 = vld [vmem:[%s1377_s0 + $0x50] sm:$0xff] }
   0xd   :  { %916 = vmatpush3.bf16.msra.mxu1 %v1022_v11  ;;  %v28_v31 = vld [vmem:[%s1377_s0 + $0x8] sm:$0xff]  ;;  %v1042_v34 = vld [vmem:[%s1376_s1 + $0x80] sm:$0xff]   ;;  %v44_v41 = vpack.c.bf16 %v37_v40, %v30_v39  ;;  %v1044_v42 = vld [vmem:[%s1376_s1 + $0x138] sm:$0xff]  }
   0xe   :  { %917 = vmatprep.subr.bf16.mxu1 %v1025_v14  ;;  %v42_v33 = vpack.c.bf16 %v35_v32, %v28_v31  ;;  %v27_v35 = vld [vmem:[%s1377_s0] sm:$0xff]  ;;  %v29_v44 = vld [vmem:[%s1377_s0 + $0x10] sm:$0xff]  ;;  %v36_v45 = vld [vmem:[%s1377_s0 + $0x48] sm:$0xff] }
   0xf   :  { %896 = vmatpush3.bf16.msra.mxu0 %v1024_v13  ;;  %v41_v37 = vpack.c.bf16 %v34_v36, %v27_v35  ;;  %524 = vmatprep.mubr.bf16.mxu1 %v44_v41  ;;  %v43_v46 = vpack.c.bf16 %v36_v45, %v29_v44  ;;  %v1045_v47 = vld [vmem:[%s1376_s1 + $0x170] sm:$0xff]   ;;  %v1047_v49 = vld [vmem:[%s1376_s1 + $0x168] sm:$0xff]   ;;  %v1049_v51 = vld [vmem:[%s1376_s1 + $0x160] sm:$0xff]  }
  0x10   :  { %897 = vmatprep.subr.bf16.mxu0 %v1027_v16  ;;  %483 = vmatprep.mubr.bf16.mxu0 %v42_v33  ;;  %v1046_v48 = vld [vmem:[%s1376_s1 + $0x130] sm:$0xff]   ;;  %v1048_v50 = vld [vmem:[%s1376_s1 + $0x128] sm:$0xff]   ;;  %v1050_v52 = vld [vmem:[%s1376_s1 + $0x120] sm:$0xff]  }
  0x11   :  { %918 = vmatpush3.bf16.msra.mxu1 %v1026_v15  ;;  %v1051_v53 = vld [vmem:[%s1376_s1 + $0x158] sm:$0xff]   ;;  %v1053_v55 = vld [vmem:[%s1376_s1 + $0x150] sm:$0xff]   ;;  %v1059_v56 = vld [vmem:[%s1376_s1 + $0x180] sm:$0xff]  }
  0x12   :  { %919 = vmatprep.subr.bf16.mxu1 %v1029_v18  ;;  %v1052_v54 = vld [vmem:[%s1376_s1 + $0x118] sm:$0xff]   ;;  %v32_v57 = vld [vmem:[%s1377_s0 + $0x28] sm:$0xff]  ;;  %v39_v58 = vld [vmem:[%s1377_s0 + $0x60] sm:$0xff] }
  0x13   :  { %898 = vmatpush3.bf16.msra.mxu0 %v1028_v17  ;;  %v1054_v59 = vld [vmem:[%s1376_s1 + $0x110] sm:$0xff]   ;;  %v46_v60 = vpack.c.bf16 %v39_v58, %v32_v57  ;;  %v40_v62 = vld [vmem:[%s1377_s0 + $0x68] sm:$0xff]  ;;  %v1057_v2 = vld [vmem:[%s1376_s1 + $0x140] sm:$0xff]  }
  0x14   :  { %899 = vmatprep.subr.bf16.mxu0 %v1031_v20  ;;  %v33_v61 = vld [vmem:[%s1377_s0 + $0x30] sm:$0xff]  ;;  %v1055_v63 = vld [vmem:[%s1376_s1 + $0x148] sm:$0xff]   ;;  %v1058_v3 = vld [vmem:[%s1376_s1 + $0x100] sm:$0xff]  }
  0x15   :  { %920 = vmatpush3.bf16.msra.mxu1 %v1030_v19  ;;  %v47_v0 = vpack.c.bf16 %v40_v62, %v33_v61  ;;  %v1056_v1 = vld [vmem:[%s1376_s1 + $0x108] sm:$0xff]   ;;  %v31_v4 = vld [vmem:[%s1377_s0 + $0x20] sm:$0xff]  ;;  %v38_v5 = vld [vmem:[%s1377_s0 + $0x58] sm:$0xff] }
  0x16   :  { %921 = vmatprep.subr.bf16.mxu1 %v1033_v22  ;;  %v45_v6 = vpack.c.bf16 %v38_v5, %v31_v4  ;;  %v1060_v7 = vld [vmem:[%s1378_s3 + $0x38] sm:$0xff]   ;;  %v1061_v8 = vld [vmem:[%s1378_s3 + $0x30] sm:$0xff]   ;;  %v1062_v9 = vld [vmem:[%s1378_s3 + $0x28] sm:$0xff]  }
  0x17   :  { %900 = vmatpush3.bf16.msra.mxu0 %v1032_v21  ;;  %v1063_v10 = vld [vmem:[%s1378_s3 + $0x20] sm:$0xff]   ;;  %v1064_v11 = vld [vmem:[%s1378_s3 + $0x18] sm:$0xff]   ;;  %v1065_v12 = vld [vmem:[%s1378_s3 + $0x10] sm:$0xff]  }
  0x18   :  { %901 = vmatprep.subr.bf16.mxu0 %v1035_v24  ;;  %v1066_v13 = vld [vmem:[%s1378_s3 + $0x8] sm:$0xff]   ;;  %v1067_v14 = vld [vmem:[%s1378_s3] sm:$0xff]   ;;  %v1068_v15 = vld [vmem:[%s1379_s5 + $0x18] sm:$0xff]  }
  0x19   :  { %922 = vmatpush3.bf16.msra.mxu1 %v1034_v23 }
  0x1a   :  { %923 = vmatprep.subr.bf16.mxu1 %v1037_v26 }
  0x1b   :  { %902 = vmatpush3.bf16.msra.mxu0 %v1036_v25 }
  0x1c   :  { %903 = vmatprep.subr.bf16.mxu0 %v1039_v28  ;;  %v823_v28 = vld [vmem:[%s1380_s2] ss:$0 sm:$0xff] }
  0x1d   :  { %924 = vmatpush3.bf16.msra.mxu1 %v1038_v27 }
  0x1e   :  { %925 = vmatprep.subr.bf16.mxu1 %v1041_v30 }
  0x1f   :  { %904 = vmatpush3.bf16.msra.mxu0 %v1040_v29 }
  0x20   :  { %933 = vmatprep.subr.bf16.mxu0 %v1043_v38 }
  0x21   :  { %926 = vmatpush3.bf16.msra.mxu1 %v1042_v34 }
  0x22   :  { %971 = vmatprep.subr.bf16.mxu1 %v1072_v43  ;;  %484 = vmatmul.mubr.bf16.vlgmr.msra.gmra.mxu0 %v41_v37 }
  0x23   :  { %934 = vmatpush3.bf16.msra.mxu0 %v1044_v42  ;;  %565 = vmatprep.mubr.bf16.mxu0 %v46_v60 }
  0x24   :  { %525 = vmatmul.mubr.bf16.vlgmr.msra.gmra.mxu1 %v43_v46  ;;  %935 = vmatprep.subr.bf16.mxu0 %v1045_v47 }
  0x25   :  { %973 = vmatprep.mubr.msk.bf16.mxu1 %vm1073_vm0, %v1072_v43  ;;  %972 = vmatpush3.bf16.msra.mxu1 %v1059_v56 }
  0x26   :  { %977 = vmatprep.subr.bf16.mxu1 %v1072_v43 }
  0x27   :  { %936 = vmatpush3.bf16.msra.mxu0 %v1046_v48 }
  0x28   :  { %937 = vmatprep.subr.bf16.mxu0 %v1047_v49 }
  0x2b   :  { %938 = vmatpush3.bf16.msra.mxu0 %v1048_v50 }
  0x2c   :  { %939 = vmatprep.subr.bf16.mxu0 %v1049_v51  ;;  %974 = vmatmul.mubr.msk.bf16.vlgmr.msra.gmra.mxu1 %vm447_vm1, %v47_v0  ;;  %v1069_v51 = vld [vmem:[%s1379_s5 + $0x10] sm:$0xff]  }
  0x2d   :  { %993 = vmatprep.mubr.msk.bf16.mxu1 %vm1073_vm0, %v1072_v43  ;;  %978 = vmatpush3.bf16.msra.mxu1 %v1060_v7 }
  0x2e   :  { %979 = vmatprep.subr.bf16.mxu1 %v1072_v43 }
  0x2f   :  { %940 = vmatpush3.bf16.msra.mxu0 %v1050_v52  ;;  %v1070_v52 = vld [vmem:[%s1379_s5 + $0x8] sm:$0xff]  }
  0x30   :  { %941 = vmatprep.subr.bf16.mxu0 %v1051_v53  ;;  %v1071_v53 = vld [vmem:[%s1379_s5] sm:$0xff]  }
  0x31   :  { %980 = vmatpush3.bf16.msra.mxu1 %v1061_v8 }
  0x32   :  { %981 = vmatprep.subr.bf16.mxu1 %v1072_v43 }
  0x33   :  { %942 = vmatpush3.bf16.msra.mxu0 %v1052_v54  ;;  %v874_v54 = vld [vmem:[%s1381_s4] ss:$0 sm:$0xff] }
  0x34   :  { %943 = vmatprep.subr.bf16.mxu0 %v1053_v55 }
  0x35   :  { %982 = vmatpush3.bf16.msra.mxu1 %v1062_v9 }
  0x36   :  { %983 = vmatprep.subr.bf16.mxu1 %v1072_v43 }
  0x37   :  { %944 = vmatpush3.bf16.msra.mxu0 %v1054_v59 }
  0x38   :  { %945 = vmatprep.subr.bf16.mxu0 %v1055_v63 }
  0x39   :  { %984 = vmatpush3.bf16.msra.mxu1 %v1063_v10 }
  0x3a   :  { %985 = vmatprep.subr.bf16.mxu1 %v1072_v43 }
  0x3b   :  { %946 = vmatpush3.bf16.msra.mxu0 %v1056_v1 }
  0x3c   :  { %947 = vmatprep.subr.bf16.mxu0 %v1057_v2 }
  0x3d   :  { %986 = vmatpush3.bf16.msra.mxu1 %v1064_v11 }
  0x3e   :  { %987 = vmatprep.subr.bf16.mxu1 %v1072_v43 }
  0x3f   :  { %948 = vmatpush3.bf16.msra.mxu0 %v1058_v3 }
  0x40   :  { %997 = vmatprep.subr.bf16.mxu0 %v1072_v43 }
  0x41   :  { %988 = vmatpush3.bf16.msra.mxu1 %v1065_v12 }
  0x42   :  { %566 = vmatmul.mubr.bf16.vlgmr.msra.gmra.mxu0 %v45_v6  ;;  %989 = vmatprep.subr.bf16.mxu1 %v1072_v43 }
  0x43   :  { %1005 = vmatprep.mubr.msk.bf16.mxu0 %vm1073_vm0, %v1072_v43  ;;  %998 = vmatpush3.bf16.msra.mxu0 %v1068_v15 }
  0x44   :  { %999 = vmatprep.subr.bf16.mxu0 %v1072_v43 }
  0x45   :  { %990 = vmatpush3.bf16.msra.mxu1 %v1066_v13 }
  0x46   :  { %991 = vmatprep.subr.bf16.mxu1 %v1072_v43 }
  0x47   :  { %1000 = vmatpush3.bf16.msra.mxu0 %v1069_v51 }
  0x48   :  { %1001 = vmatprep.subr.bf16.mxu0 %v1072_v43 }
  0x49   :  { %992 = vmatpush3.bf16.msra.mxu1 %v1067_v14 }
  0x4b   :  { %1002 = vmatpush3.bf16.msra.mxu0 %v1070_v52 }
  0x4c   :  { %1003 = vmatprep.subr.bf16.mxu0 %v1072_v43  ;;  %v883_v43 = vld [vmem:[%s1382_s6] ss:$0 sm:$0xff] }
  0x4f   :  { %1004 = vmatpush3.bf16.msra.mxu0 %v1071_v53 }
  0xe2   :  { %v905_v19 = vpop.f32.mrf.mxu0 }
  0xe4   :  { %v927_v16 = vpop.f32.mrf.mxu1  ;;  %v906_v21 = vpop.f32.mrf.mxu0 }
  0xe5   :  { %v907_v27 = vadd.f32 %v906_v21, %v905_v19 }
  0xe6   :  { %v928_v17 = vpop.f32.mrf.mxu1  ;;  %v908_v24 = vpop.f32.mrf.mxu0 }
  0xe7   :  { %v486_v30 = vadd.f32 %v907_v27, %v823_v28  ;;  %v929_v31 = vadd.f32 %v928_v17, %v927_v16 }
  0xe8   :  { %v930_v18 = vpop.f32.mrf.mxu1  ;;  %v909_v29 = vpop.f32.mrf.mxu0 }
  0xe9   :  { %v910_v32 = vadd.f32 %v909_v29, %v908_v24  ;;  %v527_v35 = vadd.f32 %v929_v31, %v486_v30 }
  0xea   :  { %v931_v20 = vpop.f32.mrf.mxu1 }
  0xeb   :  { %v489_v36 = vadd.f32 %v910_v32, %v823_v28  ;;  %v932_v37 = vadd.f32 %v931_v20, %v930_v18 }
  0xec   :  { %v608_v22 = vpop.f32.mrf.mxu1 }
  0xed   :  { %v530_v42 = vadd.f32 %v932_v37, %v489_v36 }
  0xee   :  { %v975_v23 = vpop.f32.mrf.mxu1 }
  0xf0   :  { %v611_v25 = vpop.f32.mrf.mxu1 }
  0xf2   :  { %v976_v26 = vpop.f32.mrf.mxu1 }
 0x102   :  { %v949_v33 = vpop.f32.mrf.mxu0 }
 0x104   :  { %v950_v34 = vpop.f32.mrf.mxu0 }
 0x105   :  { %v951_v38 = vadd.f32 %v950_v34, %v949_v33 }
 0x106   :  { %v952_v39 = vpop.f32.mrf.mxu0 }
 0x107   :  { %v568_v40 = vadd.f32 %v951_v38, %v527_v35 }
 0x108   :  { %v953_v41 = vpop.f32.mrf.mxu0 }
 0x109   :  { %v954_v44 = vadd.f32 %v953_v41, %v952_v39  ;;  %v609_v45 = vadd.f32 %v608_v22, %v568_v40 }
 0x10b   :  { %v571_v46 = vadd.f32 %v954_v44, %v530_v42  ;;  %v615_v48 = vmax.f32 %v609_v45, 0.0 }
 0x10d   :  { %v612_v47 = vadd.f32 %v611_v25, %v571_v46 }
 0x10f   :  { %v616_v49 = vmax.f32 %v612_v47, 0.0 }
 0x111   :  { %v617_v50 = vpack.c.bf16 %v616_v49, %v615_v48 }
 0x113   :  { %994 = vmatmul.mubr.bf16.vlgmr.msra.gmra.mxu1 %v617_v50 }
 0x1d3   :  { %v723_v55 = vpop.f32.mrf.mxu1 }
 0x1d4   :  { %v724_v57 = vadd.f32 %v874_v54, %v723_v55 }
 0x1d5   :  { %v995_v56 = vpop.f32.mrf.mxu1 }
 0x1d6   :  { %v730_v61 = vmax.f32 %v724_v57, 0.0 }
 0x1d7   :  { %v726_v58 = vpop.f32.mrf.mxu1 }
 0x1d8   :  { %v727_v59 = vadd.f32 %v874_v54, %v726_v58 }
 0x1d9   :  { %v996_v60 = vpop.f32.mrf.mxu1 }
 0x1da   :  { %v731_v62 = vmax.f32 %v727_v59, 0.0 }
 0x1dc   :  { %v732_v63 = vpack.c.bf16 %v731_v62, %v730_v61 }
 0x1de   :  { %1006 = vmatmul.mubr.msk.bf16.vlgmr.msra.gmra.mxu0 %vm772_vm2, %v732_v63 }
 0x29e   :  { %v810_v0 = vpop.f32.mrf.mxu0 }
 0x29f   :  { %v811_v1 = vadd.f32 %v883_v43, %v810_v0 }
 0x2a0   :  { %v1007_v2 = vpop.f32.mrf.mxu0 }
 0x2a1   :  { %817 = vst.msk [vmem:[%s1383_s7] sm:$0xff] %vm447_vm1, %v811_v1 }
 0x2a2   :  { %v813_v3 = vpop.f32.mrf.mxu0 }
 0x2a3   :  { %v814_v4 = vadd.f32 %v883_v43, %v813_v3 }
 0x2a4   :  { %v1008_v5 = vpop.f32.mrf.mxu0 }
 0x2a5   :  { %818 = vst.msk [vmem:[%s1383_s7 + $0x8] sm:$0xff] %vm447_vm1, %v814_v4 }

</bundles_post_ra>
